<compile_context>
chip_gen: v7x
topology: tpu7x:2x2x1
jax: 0.10.0
libtpu: 0.0.40
codegen_flags: <defaults>
</compile_context>

<pallas_src>
import functools

import jax
import jax.numpy as jnp
from jax.experimental import pallas as pl
from jax.experimental.pallas import tpu as pltpu


def channel_attention_kernel(x_ref, w1b_ref, w2b_ref, out_ref):
    """One block of Nb images per grid step.

    x_ref   : (Nb, C, HW)     input block
    w1b_ref : (MID, C + 1)    [W1 | b1]   first 1x1 conv weight + bias column
    w2b_ref : (C, MID + 1)    [W2 | b2]   second 1x1 conv weight + bias column
    out_ref : (Nb, C, HW)     output block
    """
    nb, C, _ = x_ref.shape
    mid = w1b_ref.shape[0]

    # ---- squeeze: per-image avg & max over spatial, gathered as columns ----
    # One pass over the data: each (C, HW) tile is loaded once, reduced, and
    # only the tiny (C, 1) results stay live across the matmuls below.
    avg_cols = []
    max_cols = []
    for i in range(nb):  # nb is a small static Python int -> unrolled
        xi = x_ref[i]                                          # (C, HW)
        avg_cols.append(jnp.mean(xi, axis=-1, keepdims=True))  # (C, 1)
        max_cols.append(jnp.max(xi, axis=-1, keepdims=True))   # (C, 1)
    p = jnp.concatenate(avg_cols + max_cols, axis=1)           # (C, 2*Nb)

    # ---- fused excitation: one matmul pair for all (avg|max) x images ------
    w1b = w1b_ref[...]
    w2b = w2b_ref[...]
    w1, b1 = w1b[:, :C], w1b[:, C:]      # (MID, C), (MID, 1)
    w2, b2 = w2b[:, :mid], w2b[:, mid:]  # (C, MID), (C, 1)

    h = jnp.maximum(
        jnp.dot(w1, p, preferred_element_type=jnp.float32) + b1, 0.0)   # (MID, 2*Nb)
    e = jnp.dot(w2, h, preferred_element_type=jnp.float32) + b2          # (C, 2*Nb)

    # avg-branch + max-branch (each already carries +b2, so the sum gives the
    # same 2*b2 the PyTorch module produces).
    att = jax.nn.sigmoid(e[:, :nb] + e[:, nb:])                          # (C, Nb)

    # ---- apply: attention column broadcasts over the spatial lanes ---------
    for i in range(nb):
        out_ref[i] = (x_ref[i] * att[:, i:i + 1]).astype(out_ref.dtype)


def _pick_batch_block(n, per_image_bytes, target_bytes=2 << 20,
                      min_grid_steps=2, max_nb=64):
    """Pick how many images to pack into one grid step.

    Targets ~2 MiB blocks (amortizes per-step overhead, stays well inside the
    default scoped VMEM limit with 2x double-buffering of input+output on all
    of v5e/v6e/v7x), keeps >= 2 grid steps so v7x's two TensorCores are used,
    and returns a divisor of n so blocking is exact.
    """
    nb = max(1, int(target_bytes // max(per_image_bytes, 1)))
    if n >= min_grid_steps:
        nb = min(nb, n // min_grid_steps)
    nb = max(1, min(nb, n, max_nb))
    while n % nb:
        nb -= 1
    return nb


@jax.jit
def channel_attention(x, w1, b1, w2, b2):
    """x: (N, C, H, W) float32.  Returns attention * x with the same shape."""
    N, C, H, W = x.shape
    HW = H * W
    MID = w1.shape[0]

    x_flat = x.reshape(N, C, HW)
    # Fold biases into the weight operands as an extra column -> fewer operands,
    # no standalone (MID,1)/(C,1) BlockSpecs.
    w1b = jnp.concatenate([w1, b1.reshape(MID, 1)], axis=1)  # (MID, C + 1)
    w2b = jnp.concatenate([w2, b2.reshape(C, 1)], axis=1)    # (C, MID + 1)

    nb = _pick_batch_block(N, C * HW * x.dtype.itemsize)
    grid = (N // nb,)

    # TODO(synk): if the surrounding model tolerates bf16 activations, the HBM
    # round-trip could be halved by casting x to bf16 for I/O; kept f32 here to
    # match the PyTorch module's numerics exactly.
    out = pl.pallas_call(
        channel_attention_kernel,
        out_shape=jax.ShapeDtypeStruct((N, C, HW), x.dtype),
        grid_spec=pltpu.PrefetchScalarGridSpec(
            num_scalar_prefetch=0,
            grid=grid,
            in_specs=[
                pl.BlockSpec((nb, C, HW), lambda g: (g, 0, 0)),
                pl.BlockSpec((MID, C + 1), lambda g: (0, 0)),
                pl.BlockSpec((C, MID + 1), lambda g: (0, 0)),
            ],
            out_specs=pl.BlockSpec((nb, C, HW), lambda g: (g, 0, 0)),
        ),
        compiler_params=pltpu.CompilerParams(
            dimension_semantics=("parallel",),
        ),
    )(x_flat, w1b, w2b)

    return out.reshape(N, C, H, W)


def channel_attention_reference(x, w1, b1, w2, b2):
    """Pure-JAX reference matching the PyTorch module semantics."""
    avg = jnp.mean(x, axis=(2, 3))  # (N, C)
    mx = jnp.max(x, axis=(2, 3))    # (N, C)

    def excitation(p):  # p: (N, C)
        h = jnp.maximum(p @ w1.T + b1, 0.0)  # (N, MID)
        return h @ w2.T + b2                 # (N, C)

    att = jax.nn.sigmoid(excitation(avg) + excitation(mx))  # (N, C)
    return att[:, :, None, None] * x


def _make_inputs(key, N, C, H, W, reduction):
    MID = C // reduction
    kx, kw1, kb1, kw2, kb2 = jax.random.split(key, 5)
    x = jax.random.normal(kx, (N, C, H, W), dtype=jnp.float32)
    # Conv2d(k=1) weights: PyTorch shape (out, in, 1, 1) -> stored here as (out, in).
    w1 = jax.random.normal(kw1, (MID, C), dtype=jnp.float32) * 0.1
    b1 = jax.random.normal(kb1, (MID,), dtype=jnp.float32) * 0.1
    w2 = jax.random.normal(kw2, (C, MID), dtype=jnp.float32) * 0.1
    b2 = jax.random.normal(kb2, (C,), dtype=jnp.float32) * 0.1
    return x, w1, b1, w2, b2


if __name__ == "__main__":
    # Module config: channels must be divisible by reduction_rate (=16).
    REDUCTION = 16
    key = jax.random.PRNGKey(0)
    k1, k2 = jax.random.split(key, 2)

    # Small primary config (Nb = 1, grid = 2).
    x, w1, b1, w2, b2 = _make_inputs(k1, 2, 64, 16, 16, REDUCTION)
    out = jax.block_until_ready(channel_attention(x, w1, b1, w2, b2))
    ref = channel_attention_reference(x, w1, b1, w2, b2)
    assert out.shape == x.shape and out.dtype == x.dtype
    assert jnp.allclose(out, ref, rtol=1e-5, atol=1e-5), "Pallas kernel mismatch vs reference"

    # Larger batch exercises the multi-image-per-block path (Nb = 4, grid = 2).
    x, w1, b1, w2, b2 = _make_inputs(k2, 8, 64, 16, 16, REDUCTION)
    out = jax.block_until_ready(channel_attention(x, w1, b1, w2, b2))
    ref = channel_attention_reference(x, w1, b1, w2, b2)
    assert jnp.allclose(out, ref, rtol=1e-5, atol=1e-5), "Pallas kernel mismatch vs reference (blocked)"

    print("KERNEL_OK")
</pallas_src>

<mosaic_0001>
module attributes {stable_mosaic.version = 11 : i64} {
  func.func @channel_attention_kernel(%arg0: i32, %arg1: memref<1x64x256xf32, #tpu.memory_space<vmem>>, %arg2: memref<4x65xf32, #tpu.memory_space<vmem>>, %arg3: memref<64x5xf32, #tpu.memory_space<vmem>>, %arg4: memref<1x64x256xf32, #tpu.memory_space<vmem>>) attributes {dimension_semantics = [#tpu.dimension_semantics<parallel>], iteration_bounds = array<i64: 2>, scalar_prefetch = 0 : i64, scratch_operands = 0 : i64, tpu.core_type = #tpu.core_type<tc>, window_params = [{transform_indices = @transform_0, window_bounds = array<i64: 1, 64, 256>}, {pipeline_mode = #tpu.pipeline_mode<synchronous>, transform_indices = @transform_1, window_bounds = array<i64: 4, 65>}, {pipeline_mode = #tpu.pipeline_mode<synchronous>, transform_indices = @transform_2, window_bounds = array<i64: 64, 5>}, {transform_indices = @transform_3, window_bounds = array<i64: 1, 64, 256>}]} {
    %c0 = arith.constant 0 : index
    %c0_0 = arith.constant 0 : index
    %c0_1 = arith.constant 0 : index
    %0 = vector.load %arg1[%c0, %c0_0, %c0_1] : memref<1x64x256xf32, #tpu.memory_space<vmem>>, vector<1x64x256xf32>
    %1 = vector.shape_cast %0 : vector<1x64x256xf32> to vector<64x256xf32>
    %cst = arith.constant dense<0.000000e+00> : vector<64xf32>
    %2 = vector.multi_reduction <add>, %1, %cst [1] : vector<64x256xf32> to vector<64xf32>
    %3 = vector.shape_cast %2 : vector<64xf32> to vector<64x1xf32>
    %cst_2 = arith.constant 2.560000e+02 : f32
    %4 = vector.broadcast %cst_2 : f32 to vector<64x1xf32>
    %5 = arith.divf %3, %4 : vector<64x1xf32>
    %cst_3 = arith.constant dense<0xFF800000> : vector<64xf32>
    %6 = vector.multi_reduction <maximumf>, %1, %cst_3 [1] : vector<64x256xf32> to vector<64xf32>
    %7 = vector.shape_cast %6 : vector<64xf32> to vector<64x1xf32>
    %8 = tpu.concatenate %5, %7 in 1 : vector<64x1xf32>, vector<64x1xf32> -> vector<64x2xf32>
    %c0_4 = arith.constant 0 : index
    %c0_5 = arith.constant 0 : index
    %9 = vector.load %arg2[%c0_4, %c0_5] : memref<4x65xf32, #tpu.memory_space<vmem>>, vector<4x65xf32>
    %c0_6 = arith.constant 0 : index
    %c0_7 = arith.constant 0 : index
    %10 = vector.load %arg3[%c0_6, %c0_7] : memref<64x5xf32, #tpu.memory_space<vmem>>, vector<64x5xf32>
    %11 = vector.extract_strided_slice %9 {offsets = [0, 0], sizes = [4, 64], strides = [1, 1]} : vector<4x65xf32> to vector<4x64xf32>
    %12 = vector.extract_strided_slice %9 {offsets = [0, 64], sizes = [4, 1], strides = [1, 1]} : vector<4x65xf32> to vector<4x1xf32>
    %13 = vector.extract_strided_slice %10 {offsets = [0, 0], sizes = [64, 4], strides = [1, 1]} : vector<64x5xf32> to vector<64x4xf32>
    %14 = vector.extract_strided_slice %10 {offsets = [0, 4], sizes = [64, 1], strides = [1, 1]} : vector<64x5xf32> to vector<64x1xf32>
    %cst_8 = arith.constant dense<0.000000e+00> : vector<4x2xf32>
    %15 = tpu.matmul %11, %8, %cst_8 {dimension_numbers = #tpu.dot_dimension_numbers<[1], [0], [0], [1], [0, 0, 1, 1], [], []>} : vector<4x64xf32>, vector<64x2xf32>, vector<4x2xf32> -> vector<4x2xf32>
    %16 = vector.broadcast %12 : vector<4x1xf32> to vector<4x2xf32>
    %17 = arith.addf %15, %16 : vector<4x2xf32>
    %cst_9 = arith.constant 0.000000e+00 : f32
    %18 = vector.broadcast %cst_9 : f32 to vector<4x2xf32>
    %19 = arith.maximumf %17, %18 : vector<4x2xf32>
    %cst_10 = arith.constant dense<0.000000e+00> : vector<64x2xf32>
    %20 = tpu.matmul %13, %19, %cst_10 {dimension_numbers = #tpu.dot_dimension_numbers<[1], [0], [0], [1], [0, 0, 1, 1], [], []>} : vector<64x4xf32>, vector<4x2xf32>, vector<64x2xf32> -> vector<64x2xf32>
    %21 = vector.broadcast %14 : vector<64x1xf32> to vector<64x2xf32>
    %22 = arith.addf %20, %21 : vector<64x2xf32>
    %23 = vector.extract_strided_slice %22 {offsets = [0, 0], sizes = [64, 1], strides = [1, 1]} : vector<64x2xf32> to vector<64x1xf32>
    %24 = vector.extract_strided_slice %22 {offsets = [0, 1], sizes = [64, 1], strides = [1, 1]} : vector<64x2xf32> to vector<64x1xf32>
    %25 = arith.addf %23, %24 : vector<64x1xf32>
    %26 = arith.negf %25 : vector<64x1xf32>
    %27 = math.exp %26 : vector<64x1xf32>
    %cst_11 = arith.constant 1.000000e+00 : f32
    %28 = vector.broadcast %cst_11 : f32 to vector<64x1xf32>
    %29 = arith.addf %28, %27 : vector<64x1xf32>
    %30 = arith.divf %28, %29 : vector<64x1xf32>
    %c0_12 = arith.constant 0 : index
    %c0_13 = arith.constant 0 : index
    %c0_14 = arith.constant 0 : index
    %31 = vector.load %arg1[%c0_12, %c0_13, %c0_14] : memref<1x64x256xf32, #tpu.memory_space<vmem>>, vector<1x64x256xf32>
    %32 = vector.shape_cast %31 : vector<1x64x256xf32> to vector<64x256xf32>
    %33 = vector.broadcast %30 : vector<64x1xf32> to vector<64x256xf32>
    %34 = arith.mulf %32, %33 : vector<64x256xf32>
    %c0_15 = arith.constant 0 : index
    %c0_16 = arith.constant 0 : index
    %c0_17 = arith.constant 0 : index
    %35 = vector.load %arg4[%c0_15, %c0_16, %c0_17] : memref<1x64x256xf32, #tpu.memory_space<vmem>>, vector<1x64x256xf32>
    %36 = vector.shape_cast %35 : vector<1x64x256xf32> to vector<64x256xf32>
    %37 = vector.shape_cast %34 : vector<64x256xf32> to vector<1x64x256xf32>
    tpu.vector_store %arg4[%c0_15, %c0_16, %c0_17], %37 {strides = array<i32>} : memref<1x64x256xf32, #tpu.memory_space<vmem>>, vector<1x64x256xf32>,
    return
  }
  func.func @transform_0(%arg0: i32) -> (i32, i32, i32) {
    %c0_i32 = arith.constant 0 : i32
    %c0_i32_0 = arith.constant 0 : i32
    %c0_i32_1 = arith.constant 0 : i32
    return %arg0, %c0_i32, %c0_i32_0 : i32, i32, i32
  }
  func.func @transform_1(%arg0: i32) -> (i32, i32) {
    %c0_i32 = arith.constant 0 : i32
    %c0_i32_0 = arith.constant 0 : i32
    %c0_i32_1 = arith.constant 0 : i32
    return %c0_i32, %c0_i32_0 : i32, i32
  }
  func.func @transform_2(%arg0: i32) -> (i32, i32) {
    %c0_i32 = arith.constant 0 : i32
    %c0_i32_0 = arith.constant 0 : i32
    %c0_i32_1 = arith.constant 0 : i32
    return %c0_i32, %c0_i32_0 : i32, i32
  }
  func.func @transform_3(%arg0: i32) -> (i32, i32, i32) {
    %c0_i32 = arith.constant 0 : i32
    %c0_i32_0 = arith.constant 0 : i32
    %c0_i32_1 = arith.constant 0 : i32
    return %arg0, %c0_i32, %c0_i32_0 : i32, i32, i32
  }
}

</mosaic_0001>

<bundles_post_ra>
// kernel: channel_attention.1
= control target key start
LH: loop header
LB: loop body
LE: loop exit
PB: predicated region body
PF: predicated region fallthrough
CT: control target
= control target key end

     0   :  { %s902_s12 = smov 0   ;;  %s1085_s0 = inlined_call_operand.vmem [shape: f32[2,64,256], index: 0, kind: input, shape index: {}]   ;;  %s1086_s1 = inlined_call_operand.vmem [shape: f32[4,65], index: 1, kind: input, shape index: {}]   ;;  %s1087_s2 = inlined_call_operand.vmem [shape: f32[64,5], index: 2, kind: input, shape index: {}]   ;;  %s1088_s3 = inlined_call_operand.vmem [shape: f32[2,64,256], index: 3, kind: output, shape index: {}]  }
   0x1 LB: > { %s722_s13 = sadd.s32 4294967295, %s873_s12   ;;  %p726_p0 = scmp.ge.s32.totalorder %s873_s12, 1  ;;  %s873_s12 = sphi %s902_s12, %s13_s12  }
   0x2   : > { %p137_p1 = scmp.lt.s32.totalorder %s873_s12, 3 }
   0x4   : > { %p138_p2 = pnand %p726_p0, %p137_p1 }
   0x5   : > { %p161_p3 = scmp.lt.s32.totalorder (!%p138_p2), %s722_s13, 1  ;;  %v875_v30 = vmov (!%p138_p2), 0.0|0.0   ;;  %vm876_vm0 = vmmov (!%p138_p2), 0   ;;  %v877_v33 = vmov (!%p138_p2), 0.0   ;;  %v253_v34 = vld [vmem:[%s1086_s1] sm:$0xf] (!%p138_p2) }
   0x6   : > { %141 = sbr.rel (%p138_p2) target bundleno = 916 (0x394), region = 32  ;;  %804 = vmatprep.subr.bf16.mxu0 (!%p138_p2), %v875_v30  ;;  %787 = vmatprep.mubr.msk.f32.mxu0 (!%p138_p2), %vm876_vm0, %v877_v33  ;;  %v878_v35 = vmov (!%p138_p2), 64   ;;  %vm244_vm1 = vcmask (!%p138_p2), 7168   ;;  %vm267_vm2 = vcmask (!%p138_p2), 523264   ;;  %vm381_vm3 = vcmask (!%p138_p2), 31744   ;;  %s880_s9 = smov (!%p138_p2), 127  }
   0x7   : > { %831 = vset.pattern.permute.xlu0 (!%p138_p2), %v878_v35  ;;  %vm398_vm4 = vcmask (!%p138_p2), 1043456  }
   0xd   : > { %s1090_s13 = smov (!%p161_p3, %s722_s13), 1 }
   0xe   : > { %s751_s14 = sshll.u32 %s1090_s13, 7 }
   0xf   : > { %s918_s17 = scalar_lea.vmem %s1085_s0, %s751_s14  ;;  %s1048_s15 = scalar_lea.vmem %s1088_s3, %s751_s14 }
  0x10   : > { %v921_v0 = vld [vmem:[%s918_s17] sm:$0xff]  ;;  %v924_v1 = vld [vmem:[%s918_s17 + $0x8] sm:$0xff]  ;;  %v927_v2 = vld [vmem:[%s918_s17 + $0x10] sm:$0xff] }
  0x11   : > { %v220_v3 = vmax.f32 %v921_v0, %v924_v1  ;;  %v187_v4 = vadd.f32 %v924_v1, %v921_v0  ;;  %v934_v5 = vld [vmem:[%s918_s17 + $0x18] sm:$0xff]  ;;  %v941_v8 = vld [vmem:[%s918_s17 + $0x30] sm:$0xff]  ;;  %v947_v10 = vld [vmem:[%s918_s17 + $0x20] sm:$0xff] }
  0x12   : > { %v223_v6 = vmax.f32 %v927_v2, %v934_v5  ;;  %v190_v7 = vadd.f32 %v934_v5, %v927_v2  ;;  %v944_v9 = vld [vmem:[%s918_s17 + $0x38] sm:$0xff]  ;;  %v950_v11 = vld [vmem:[%s918_s17 + $0x28] sm:$0xff]  ;;  %v961_v16 = vld [vmem:[%s918_s17 + $0x50] sm:$0xff] }
  0x13   : > { %221 = vmax.xlane.f32.xlu1 %v220_v3  ;;  %188 = vadd.xlane.f32.xlu0 %v187_v4  ;;  %v196_v12 = vadd.f32 %v944_v9, %v941_v8  ;;  %v193_v13 = vadd.f32 %v950_v11, %v947_v10  ;;  %v229_v14 = vmax.f32 %v941_v8, %v944_v9  ;;  %v964_v17 = vld [vmem:[%s918_s17 + $0x58] sm:$0xff]  ;;  %v967_v18 = vld [vmem:[%s918_s17 + $0x40] sm:$0xff]  ;;  %v970_v19 = vld [vmem:[%s918_s17 + $0x48] sm:$0xff] }
  0x14   : > { %v226_v15 = vmax.f32 %v947_v10, %v950_v11  ;;  %v202_v20 = vadd.f32 %v964_v17, %v961_v16  ;;  %v199_v21 = vadd.f32 %v970_v19, %v967_v18  ;;  %v235_v22 = vmax.f32 %v961_v16, %v964_v17  ;;  %v981_v24 = vld [vmem:[%s918_s17 + $0x70] sm:$0xff]  ;;  %v984_v25 = vld [vmem:[%s918_s17 + $0x78] sm:$0xff]  ;;  %v987_v26 = vld [vmem:[%s918_s17 + $0x60] sm:$0xff] }
  0x15   : > { %v232_v23 = vmax.f32 %v967_v18, %v970_v19  ;;  %v990_v27 = vld [vmem:[%s918_s17 + $0x68] sm:$0xff]  ;;  %v208_v28 = vadd.f32 %v984_v25, %v981_v24  ;;  %v241_v31 = vmax.f32 %v981_v24, %v984_v25 }
  0x16   : > { %v205_v29 = vadd.f32 %v990_v27, %v987_v26  ;;  %v238_v32 = vmax.f32 %v987_v26, %v990_v27 }
  0x17   : > { %224 = vmax.xlane.f32.xlu1 %v223_v6  ;;  %191 = vadd.xlane.f32.xlu0 %v190_v7 }
  0x1b   : > { %197 = vadd.xlane.f32.xlu1 %v196_v12  ;;  %194 = vadd.xlane.f32.xlu0 %v193_v13 }
  0x1f   : > { %230 = vmax.xlane.f32.xlu1 %v229_v14  ;;  %227 = vmax.xlane.f32.xlu0 %v226_v15 }
  0x23   : > { %203 = vadd.xlane.f32.xlu1 %v202_v20  ;;  %200 = vadd.xlane.f32.xlu0 %v199_v21  ;;  %v254_v20 = vld [vmem:[%s1087_s2] sm:$0xff]  ;;  %v879_v21 = vmov 4  }
  0x24   : > { %792 = vmatprep.mubr.msk.f32.mxu1 %vm381_vm3, %v254_v20  ;;  %832 = vset.pattern.permute.xlu1 %v879_v21 }
  0x27   : > { %236 = vmax.xlane.f32.xlu1 %v235_v22  ;;  %233 = vmax.xlane.f32.xlu0 %v232_v23  ;;  %v255_v22 = vld [vmem:[%s1087_s2 + $0x8] sm:$0xff]  ;;  %v256_v23 = vld [vmem:[%s1087_s2 + $0x10] sm:$0xff] }
  0x2b   : > { %209 = vadd.xlane.f32.xlu1 %v208_v28  ;;  %206 = vadd.xlane.f32.xlu0 %v205_v29  ;;  %v257_v28 = vld [vmem:[%s1087_s2 + $0x18] sm:$0xff]  ;;  %v258_v29 = vld [vmem:[%s1087_s2 + $0x20] sm:$0xff] }
  0x2f   : > { %242 = vmax.xlane.f32.xlu1 %v241_v31  ;;  %239 = vmax.xlane.f32.xlu0 %v238_v32  ;;  %v260_v31 = vld [vmem:[%s1087_s2 + $0x30] sm:$0xff]  ;;  %v261_v32 = vld [vmem:[%s1087_s2 + $0x38] sm:$0xff] }
  0x40   : > { %343 = vperm.xlu1 %832, %v254_v20  }
  0x44   : > { %348 = vperm.xlu1 %832, %v255_v22  }
  0x45   : > { %264 = vperm.xlu0 %831, %v253_v34  }
  0x48   : > { %353 = vperm.xlu1 %832, %v256_v23  }
  0x4c   : > { %358 = vperm.xlu1 %832, %v257_v28  }
  0x50   : > { %363 = vperm.xlu1 %832, %v258_v29  }
  0xa0   : > { %v222_v36 = vpop.xlane.xlu1 %221  ;;  %v189_v37 = vpop.xlane.xlu0 %188 }
  0xa1   : > { %v212_v38 = vmul.f32 0.00390625, %v189_v37 }
  0xa3   : > { %v245_v42 = vsel %vm244_vm1, %v212_v38, %v222_v36 }
  0xa4   : > { %v225_v39 = vpop.xlane.xlu1 %224  ;;  %v192_v40 = vpop.xlane.xlu0 %191 }
  0xa5   : > { %v213_v41 = vmul.f32 0.00390625, %v192_v40 }
  0xa7   : > { %v246_v43 = vsel %vm244_vm1, %v213_v41, %v225_v39 }
  0xa8   : > { %v198_v44 = vpop.xlane.xlu1 %197  ;;  %v195_v45 = vpop.xlane.xlu0 %194  ;;  %v805_v46 = vpack.c.bf16 %v246_v43, %v245_v42 }
  0xa9   : > { %v215_v47 = vmul.f32 0.00390625, %v198_v44  ;;  %v214_v48 = vmul.f32 0.00390625, %v195_v45 }
  0xaa   : > { %806 = vmatpush3.bf16.msra.mxu0 %v805_v46 }
  0xab   : > { %807 = vmatprep.subr.bf16.mxu0 %v875_v30 }
  0xac   : > { %v231_v49 = vpop.xlane.xlu1 %230  ;;  %v228_v50 = vpop.xlane.xlu0 %227 }
  0xad   : > { %v248_v51 = vsel %vm244_vm1, %v215_v47, %v231_v49  ;;  %v247_v52 = vsel %vm244_vm1, %v214_v48, %v228_v50 }
  0xae   : > { %v808_v53 = vpack.c.bf16 %v248_v51, %v247_v52 }
  0xb0   : > { %v204_v54 = vpop.xlane.xlu1 %203  ;;  %809 = vmatpush3.bf16.msra.mxu0 %v808_v53  ;;  %v201_v55 = vpop.xlane.xlu0 %200 }
  0xb1   : > { %810 = vmatprep.subr.bf16.mxu0 %v875_v30  ;;  %v217_v56 = vmul.f32 0.00390625, %v204_v54  ;;  %v216_v57 = vmul.f32 0.00390625, %v201_v55 }
  0xb4   : > { %v237_v58 = vpop.xlane.xlu1 %236  ;;  %v234_v59 = vpop.xlane.xlu0 %233 }
  0xb5   : > { %v250_v60 = vsel %vm244_vm1, %v217_v56, %v237_v58  ;;  %v249_v61 = vsel %vm244_vm1, %v216_v57, %v234_v59 }
  0xb6   : > { %v811_v62 = vpack.c.bf16 %v250_v60, %v249_v61 }
  0xb8   : > { %v210_v63 = vpop.xlane.xlu1 %209  ;;  %812 = vmatpush3.bf16.msra.mxu0 %v811_v62  ;;  %v207_v3 = vpop.xlane.xlu0 %206  ;;  %v881_v62 = vmov 0  }
  0xb9   : > { %813 = vmatprep.subr.bf16.mxu0 %v875_v30  ;;  %v219_v4 = vmul.f32 0.00390625, %v210_v63  ;;  %v218_v6 = vmul.f32 0.00390625, %v207_v3  ;;  %v259_v30 = vld [vmem:[%s1087_s2 + $0x28] sm:$0xff]  ;;  %834 = vset.pattern.permute.xlu0 %v881_v62 }
  0xba   : > { %368 = vperm.xlu1 %832, %v259_v30  }
  0xbc   : > { %v243_v7 = vpop.xlane.xlu1 %242  ;;  %v240_v12 = vpop.xlane.xlu0 %239 }
  0xbd   : > { %v252_v13 = vsel %vm244_vm1, %v219_v4, %v243_v7  ;;  %v251_v14 = vsel %vm244_vm1, %v218_v6, %v240_v12 }
  0xbe   : > { %v814_v15 = vpack.c.bf16 %v252_v13, %v251_v14  ;;  %373 = vperm.xlu1 %832, %v260_v31  }
  0xc0   : > { %815 = vmatpush3.bf16.msra.mxu0 %v814_v15  ;;  %v344_v38 = vpop.permute.xlu1 %343 }
  0xc2   : > { %378 = vperm.xlu1 %832, %v261_v32  }
  0xc3   : > { %788 = vmatmul.mubr.msk.f32.vlgmr.msra.gmra.mrb[0].mxu0 %vm267_vm2, %v253_v34 }
  0xc4   : > { %v265_v33 = vpop.permute.xlu0 %264  ;;  %v349_v39 = vpop.permute.xlu1 %348 }
  0xc6   : > { %833 = vset.pattern.permute.xlu1 %v881_v62 }
  0xc8   : > { %v354_v40 = vpop.permute.xlu1 %353 }
  0xcc   : > { %v359_v41 = vpop.permute.xlu1 %358 }
  0xd0   : > { %v364_v42 = vpop.permute.xlu1 %363 }
 0x139   : > { %v369_v43 = vpop.permute.xlu1 %368 }
 0x13d   : > { %v374_v51 = vpop.permute.xlu1 %373 }
 0x141   : > { %v379_v57 = vpop.permute.xlu1 %378 }
 0x196   : > { %v336_v34 = vpop.f32.mrb[0].mxu0 }
 0x197   : > { %v337_v35 = vadd.f32 %v336_v34, %v265_v33  ;;  %v789_v36 = vpop.f32.mrb[1].mxu0 }
 0x199   : > { %v340_v37 = vmax.f32 %v337_v35, 0.0 }
 0x19b   : > { %790 = vmatprep.subr.msk.mxu1 %vm398_vm4, %v340_v37 }
 0x19c   : > { %791 = vmatpush3.msk.msra.mxu1 %vm398_vm4, %v340_v37 }
 0x19d   : > { %793 = vmatmul.mubr.msk.f32.vlgmr.msra.gmra.mrb[0].mxu1 %vm381_vm3, %v255_v22 }
 0x19e   : > { %795 = vmatprep.mubr.msk.f32.mxu1 %vm381_vm3, %v256_v23 }
 0x1a1   : > { %796 = vmatmul.mubr.msk.f32.gmra.mrb[2].mxu1 %vm381_vm3, %v257_v28 }
 0x1a2   : > { %798 = vmatprep.mubr.msk.f32.mxu1 %vm381_vm3, %v258_v29 }
 0x1a5   : > { %799 = vmatmul.mubr.msk.f32.gmra.mrb[4].mxu1 %vm381_vm3, %v259_v30 }
 0x1a6   : > { %801 = vmatprep.mubr.msk.f32.mxu1 %vm381_vm3, %v260_v31 }
 0x1a9   : > { %802 = vmatmul.mubr.msk.f32.gmra.mrb[6].mxu1 %vm381_vm3, %v261_v32 }
 0x270   : > { %v794_v44 = vpop.f32.mrb[0].mxu1 }
 0x271   : > { %v474_v45 = vadd.f32 %v794_v44, %v349_v39  ;;  %v468_v46 = vpop.f32.mrb[1].mxu1 }
 0x272   : > { %v469_v47 = vadd.f32 %v468_v46, %v344_v38 }
 0x273   : > { %517 = vrot.lane.b32.xlu1 %v474_v45, %s880_s9 }
 0x274   : > { %v797_v48 = vpop.f32.mrb[2].mxu1  ;;  %515 = vrot.lane.b32.xlu0 %v469_v47, %s880_s9 }
 0x275   : > { %v484_v49 = vadd.f32 %v797_v48, %v359_v41  ;;  %v478_v50 = vpop.f32.mrb[3].mxu1 }
 0x276   : > { %v479_v52 = vadd.f32 %v478_v50, %v354_v40 }
 0x277   : > { %521 = vrot.lane.b32.xlu1 %v484_v49, %s880_s9 }
 0x278   : > { %v800_v53 = vpop.f32.mrb[4].mxu1  ;;  %519 = vrot.lane.b32.xlu0 %v479_v52, %s880_s9 }
 0x279   : > { %v494_v54 = vadd.f32 %v800_v53, %v369_v43  ;;  %v488_v55 = vpop.f32.mrb[5].mxu1 }
 0x27a   : > { %v489_v56 = vadd.f32 %v488_v55, %v364_v42 }
 0x27b   : > { %525 = vrot.lane.b32.xlu1 %v494_v54, %s880_s9 }
 0x27c   : > { %v803_v58 = vpop.f32.mrb[6].mxu1  ;;  %523 = vrot.lane.b32.xlu0 %v489_v56, %s880_s9 }
 0x27d   : > { %v504_v59 = vadd.f32 %v803_v58, %v379_v57  ;;  %v498_v60 = vpop.f32.mrb[7].mxu1 }
 0x27e   : > { %v499_v61 = vadd.f32 %v498_v60, %v374_v51 }
 0x27f   : > { %529 = vrot.lane.b32.xlu1 %v504_v59, %s880_s9 }
 0x280   : > { %527 = vrot.lane.b32.xlu0 %v499_v61, %s880_s9 }
 0x2e5   : > { %v518_v63 = vpop.permute.xlu1 %517 }
 0x2e6   : > { %v540_v3 = vadd.f32 %v518_v63, %v474_v45  ;;  %v516_v4 = vpop.permute.xlu0 %515 }
 0x2e7   : > { %v539_v6 = vadd.f32 %v516_v4, %v469_v47 }
 0x2e8   : > { %v742_v7 = vmul.f32 -1.442695, %v540_v3 }
 0x2e9   : > { %v741_v12 = vmul.f32 -1.442695, %v539_v6  ;;  %v522_v13 = vpop.permute.xlu1 %521 }
 0x2ea   : > { %835 = vpow2.f32 %v742_v7  ;;  %v542_v14 = vadd.f32 %v522_v13, %v484_v49  ;;  %v520_v15 = vpop.permute.xlu0 %519 }
 0x2eb   : > { %837 = vpow2.f32 %v741_v12  ;;  %v541_v20 = vadd.f32 %v520_v15, %v479_v52 }
 0x2ec   : > { %v744_v21 = vmul.f32 -1.442695, %v542_v14 }
 0x2ed   : > { %v743_v22 = vmul.f32 -1.442695, %v541_v20  ;;  %v526_v23 = vpop.permute.xlu1 %525 }
 0x2ee   : > { %839 = vpow2.f32 %v744_v21  ;;  %v544_v28 = vadd.f32 %v526_v23, %v494_v54  ;;  %v524_v29 = vpop.permute.xlu0 %523 }
 0x2ef   : > { %841 = vpow2.f32 %v743_v22  ;;  %v543_v30 = vadd.f32 %v524_v29, %v489_v56 }
 0x2f0   : > { %v746_v31 = vmul.f32 -1.442695, %v544_v28 }
 0x2f1   : > { %v745_v32 = vmul.f32 -1.442695, %v543_v30  ;;  %v530_v33 = vpop.permute.xlu1 %529 }
 0x2f2   : > { %843 = vpow2.f32 %v746_v31  ;;  %v546_v34 = vadd.f32 %v530_v33, %v504_v59  ;;  %v528_v35 = vpop.permute.xlu0 %527 }
 0x2f3   : > { %845 = vpow2.f32 %v745_v32  ;;  %v545_v36 = vadd.f32 %v528_v35, %v499_v61 }
 0x2f4   : > { %v836_v37 = vpop.eup %835  ;;  %v748_v38 = vmul.f32 -1.442695, %v546_v34 }
 0x2f5   : > { %v838_v39 = vpop.eup %837  ;;  %v572_v40 = vadd.f32 1.0, %v836_v37  ;;  %v747_v41 = vmul.f32 -1.442695, %v545_v36 }
 0x2f6   : > { %v571_v42 = vadd.f32 1.0, %v838_v39  ;;  %847 = vpow2.f32 %v748_v38 }
 0x2f7   : > { %849 = vrcp.f32 %v572_v40 }
 0x2f8   : > { %v840_v43 = vpop.eup %839  ;;  %851 = vrcp.f32 %v571_v42 }
 0x2f9   : > { %v842_v44 = vpop.eup %841  ;;  %v574_v45 = vadd.f32 1.0, %v840_v43  ;;  %853 = vpow2.f32 %v747_v41 }
 0x2fa   : > { %v573_v46 = vadd.f32 1.0, %v842_v44 }
 0x2fb   : > { %855 = vrcp.f32 %v574_v45 }
 0x2fc   : > { %v844_v47 = vpop.eup %843  ;;  %857 = vrcp.f32 %v573_v46 }
 0x2fd   : > { %v846_v48 = vpop.eup %845  ;;  %v576_v49 = vadd.f32 1.0, %v844_v47 }
 0x2fe   : > { %v575_v50 = vadd.f32 1.0, %v846_v48 }
 0x2ff   : > { %859 = vrcp.f32 %v576_v49 }
 0x300   : > { %v848_v51 = vpop.eup %847  ;;  %861 = vrcp.f32 %v575_v50 }
 0x301   : > { %v850_v52 = vpop.eup %849  ;;  %v578_v53 = vadd.f32 1.0, %v848_v51 }
 0x302   : > { %v852_v54 = vpop.eup %851  ;;  %602 = vperm.xlu1 %833, %v850_v52  }
 0x303   : > { %v854_v55 = vpop.eup %853  ;;  %863 = vrcp.f32 %v578_v53  ;;  %597 = vperm.xlu0 %834, %v852_v54  }
 0x304   : > { %v577_v56 = vadd.f32 1.0, %v854_v55 }
 0x305   : > { %v856_v57 = vpop.eup %855 }
 0x306   : > { %v858_v58 = vpop.eup %857  ;;  %865 = vrcp.f32 %v577_v56 }
 0x307   : > { %612 = vperm.xlu0 %834, %v856_v57   ;;  %607 = vperm.xlu1 %833, %v858_v58  }
 0x309   : > { %v860_v59 = vpop.eup %859 }
 0x30a   : > { %v862_v60 = vpop.eup %861 }
 0x30b   : > { %622 = vperm.xlu0 %834, %v860_v59   ;;  %617 = vperm.xlu1 %833, %v862_v60  }
 0x30d   : > { %v864_v61 = vpop.eup %863 }
 0x30f   : > { %632 = vperm.xlu0 %834, %v864_v61  }
 0x310   : > { %v866_v62 = vpop.eup %865 }
 0x311   : > { %627 = vperm.xlu1 %833, %v866_v62  }
 0x381   : > { %v603_v63 = vpop.permute.xlu1 %602 }
 0x382   : > { %v637_v3 = vmul.f32 %v603_v63, %v927_v2  ;;  %v638_v4 = vmul.f32 %v603_v63, %v934_v5  ;;  %v598_v6 = vpop.permute.xlu0 %597 }
 0x383   : > { %v635_v7 = vmul.f32 %v598_v6, %v921_v0  ;;  %v636_v12 = vmul.f32 %v598_v6, %v924_v1 }
 0x384   : > { %653 = vst [vmem:[%s1048_s15 + $0x10] sm:$0xff] %v637_v3  ;;  %654 = vst [vmem:[%s1048_s15 + $0x18] sm:$0xff] %v638_v4 }
 0x385   : > { %651 = vst [vmem:[%s1048_s15] sm:$0xff] %v635_v7  ;;  %652 = vst [vmem:[%s1048_s15 + $0x8] sm:$0xff] %v636_v12 }
 0x386   : > { %v608_v13 = vpop.permute.xlu1 %607  ;;  %v613_v14 = vpop.permute.xlu0 %612 }
 0x387   : > { %v639_v2 = vmul.f32 %v608_v13, %v947_v10  ;;  %v640_v5 = vmul.f32 %v608_v13, %v950_v11  ;;  %v641_v15 = vmul.f32 %v613_v14, %v941_v8  ;;  %v642_v0 = vmul.f32 %v613_v14, %v944_v9 }
 0x389   : > { %655 = vst [vmem:[%s1048_s15 + $0x20] sm:$0xff] %v639_v2  ;;  %656 = vst [vmem:[%s1048_s15 + $0x28] sm:$0xff] %v640_v5 }
 0x38a   : > { %657 = vst [vmem:[%s1048_s15 + $0x30] sm:$0xff] %v641_v15  ;;  %658 = vst [vmem:[%s1048_s15 + $0x38] sm:$0xff] %v642_v0  ;;  %v618_v1 = vpop.permute.xlu1 %617  ;;  %v623_v20 = vpop.permute.xlu0 %622 }
 0x38b   : > { %v643_v21 = vmul.f32 %v618_v1, %v967_v18  ;;  %v644_v10 = vmul.f32 %v618_v1, %v970_v19  ;;  %v645_v11 = vmul.f32 %v623_v20, %v961_v16  ;;  %v646_v8 = vmul.f32 %v623_v20, %v964_v17 }
 0x38d   : > { %659 = vst [vmem:[%s1048_s15 + $0x40] sm:$0xff] %v643_v21  ;;  %660 = vst [vmem:[%s1048_s15 + $0x48] sm:$0xff] %v644_v10 }
 0x38e   : > { %661 = vst [vmem:[%s1048_s15 + $0x50] sm:$0xff] %v645_v11  ;;  %662 = vst [vmem:[%s1048_s15 + $0x58] sm:$0xff] %v646_v8  ;;  %v633_v9 = vpop.permute.xlu0 %632 }
 0x38f   : > { %v649_v22 = vmul.f32 %v633_v9, %v981_v24  ;;  %v650_v23 = vmul.f32 %v633_v9, %v984_v25 }
 0x390   : > { %v628_v28 = vpop.permute.xlu1 %627 }
 0x391   : > { %v647_v18 = vmul.f32 %v628_v28, %v987_v26  ;;  %v648_v29 = vmul.f32 %v628_v28, %v990_v27  ;;  %665 = vst [vmem:[%s1048_s15 + $0x70] sm:$0xff] %v649_v22  ;;  %666 = vst [vmem:[%s1048_s15 + $0x78] sm:$0xff] %v650_v23 }
 0x393   : > { %663 = vst [vmem:[%s1048_s15 + $0x60] sm:$0xff] %v647_v18  ;;  %664 = vst [vmem:[%s1048_s15 + $0x68] sm:$0xff] %v648_v29 }
 0x394 PF: > { %s13_s12 = sadd.s32 1, %s873_s12  }
 0x395   : > { %p10_p4 = scmp.ge.s32.totalorder %s13_s12, 4  }
 0x397   :  { %12 = sbr.rel (!%p10_p4) target bundleno = 1 (0x1), region = 62 }

</bundles_post_ra>
